<compile_context>
chip_gen: v7x
topology: tpu7x:2x2x1
jax: 0.10.0
libtpu: 0.0.40
codegen_flags: <defaults>
</compile_context>

<pallas_src>
import jax
import jax.numpy as jnp
from jax.experimental import pallas as pl
from jax.experimental.pallas import tpu as pltpu


# --------------------------------------------------------------------------- #
# Kernel
# --------------------------------------------------------------------------- #
def lstm_cell_kernel(xh_ref, c_ref, w_ref, b_ref, h_out_ref, c_out_ref):
    # Single fused MXU matmul: gates = [x, h] @ [Wx^T; Wh^T] + (bx + bh)
    gates = (
        jnp.dot(xh_ref[...], w_ref[...], preferred_element_type=jnp.float32)
        + b_ref[...]
    )

    hq = gates.shape[-1] // 4  # torch.chunk(gates, 4, dim=1)
    input_gate = gates[:, 0 * hq:1 * hq]
    forget_gate = gates[:, 1 * hq:2 * hq]
    cell_gate = gates[:, 2 * hq:3 * hq]
    output_gate = gates[:, 3 * hq:4 * hq]

    # Elementwise gate math in fp32 (EUP transcendentals, VPU mul/add).
    f_t = jax.nn.sigmoid(forget_gate)
    i_t = jax.nn.sigmoid(input_gate)
    g_t = jnp.tanh(cell_gate)
    o_t = jax.nn.sigmoid(output_gate)

    c_t = c_ref[...].astype(jnp.float32) * f_t + i_t * g_t
    h_t = o_t * jnp.tanh(c_t)

    h_out_ref[...] = h_t.astype(h_out_ref.dtype)
    c_out_ref[...] = c_t.astype(c_out_ref.dtype)


# --------------------------------------------------------------------------- #
# One-time parameter preparation (hoisted out of the per-step call)
# --------------------------------------------------------------------------- #
def fuse_lstm_cell_params(wx, bx, wh, bh):
    """Fuse x2h / h2h Linear params into a single (input+hidden, hidden) weight
    and a single (1, hidden) bias. Call ONCE; reuse the result every step.

    wx: (hidden, input)   bx: (hidden,)    -- PyTorch nn.Linear layout
    wh: (hidden, hidden)  bh: (hidden,)
    """
    w_fused = jnp.concatenate([wx.T, wh.T], axis=0)   # (input + hidden, hidden)
    b_fused = (bx + bh).reshape(1, -1)                # (1, hidden)
    # Optional (v6e/v7x): halve weight HBM traffic with
    #   w_fused = w_fused.astype(jnp.bfloat16)
    return w_fused, b_fused


def _pick_batch_block(batch):
    """Largest convenient batch tile that evenly divides `batch` (multiple of 8
    when tiling; whole batch when small)."""
    if batch <= 256:
        return batch
    for blk in (256, 128, 64, 32, 16, 8):
        if batch % blk == 0:
            return blk
    return batch


# --------------------------------------------------------------------------- #
# Forward wrapper (mirrors LSTMCell.forward)
# --------------------------------------------------------------------------- #
def lstm_cell_forward(x_t, ht_1, w_fused, b_fused):
    """x_t: (B, input).  ht_1: None or (h_prev (B, hidden), c_prev (B, hidden//4)).
    w_fused / b_fused: from fuse_lstm_cell_params."""
    B = x_t.shape[0]
    K, H = w_fused.shape          # K = input + hidden, H = hidden_size
    hq = H // 4

    if ht_1 is None:
        # Reference default is zeros. Its declared zero c_prev is (B, H), which
        # is shape-inconsistent with the later (B, H//4) elementwise multiply;
        # since it is all-zero, (B, H//4) zeros are numerically identical.
        h_prev = jnp.zeros((B, H), x_t.dtype)
        c_prev = jnp.zeros((B, hq), x_t.dtype)
    else:
        h_prev, c_prev = ht_1

    # Fused operand for the single matmul: [x | h] of shape (B, input + hidden).
    xh = jnp.concatenate([x_t, h_prev.astype(x_t.dtype)], axis=1)

    block_b = _pick_batch_block(B)
    grid = (B // block_b,)

    # Explicit VMEM budget: weight + bias + double-buffered per-tile operands,
    # clamped to [32 MiB, 64 MiB] so it is safe on v5e/v6e and v7x alike.
    est = 4 * (K * H + H) + 2 * 4 * block_b * (K + 3 * hq) + (2 << 20)
    vmem_limit = int(min(max(est, 32 * 1024 * 1024), 64 * 1024 * 1024))

    h_t, c_t = pl.pallas_call(
        lstm_cell_kernel,
        out_shape=(
            jax.ShapeDtypeStruct((B, hq), x_t.dtype),
            jax.ShapeDtypeStruct((B, hq), x_t.dtype),
        ),
        grid=grid,
        in_specs=[
            pl.BlockSpec((block_b, K), lambda b: (b, 0)),     # [x | h] tile
            pl.BlockSpec((block_b, hq), lambda b: (b, 0)),    # c_prev tile
            pl.BlockSpec((K, H), lambda b: (0, 0)),           # fused weight (resident)
            pl.BlockSpec((1, H), lambda b: (0, 0)),           # fused bias (resident)
        ],
        out_specs=(
            pl.BlockSpec((block_b, hq), lambda b: (b, 0)),    # h_t tile
            pl.BlockSpec((block_b, hq), lambda b: (b, 0)),    # c_t tile
        ),
        compiler_params=pltpu.CompilerParams(
            dimension_semantics=("parallel",),
            vmem_limit_bytes=vmem_limit,
        ),
    )(xh, c_prev, w_fused, b_fused)

    return h_t, c_t


# --------------------------------------------------------------------------- #
# Reference + test
# --------------------------------------------------------------------------- #
def _init_linear(key, out_features, in_features):
    # PyTorch nn.Linear default init: U(-1/sqrt(in), 1/sqrt(in)) for W and b.
    k_w, k_b = jax.random.split(key)
    bound = 1.0 / (in_features ** 0.5)
    w = jax.random.uniform(k_w, (out_features, in_features), jnp.float32,
                           minval=-bound, maxval=bound)
    b = jax.random.uniform(k_b, (out_features,), jnp.float32,
                           minval=-bound, maxval=bound)
    return w, b


def _reference(x_t, h_prev, c_prev, wx, bx, wh, bh):
    gates = x_t @ wx.T + bx + h_prev @ wh.T + bh
    hq = gates.shape[-1] // 4
    i_g = gates[:, 0:hq]
    f_g = gates[:, hq:2 * hq]
    g_g = gates[:, 2 * hq:3 * hq]
    o_g = gates[:, 3 * hq:4 * hq]
    f_t = jax.nn.sigmoid(f_g)
    i_t = jax.nn.sigmoid(i_g)
    c_t_d = jnp.tanh(g_g)
    o_t = jax.nn.sigmoid(o_g)
    c_t = c_prev * f_t + i_t * c_t_d
    h_t = o_t * jnp.tanh(c_t)
    return h_t, c_t


if __name__ == "__main__":
    batch = 8
    input_size = 64
    hidden_size = 128  # each gate / state chunk is hidden_size // 4 = 32

    key = jax.random.PRNGKey(0)
    k_x, k_h, k_c, k_x2h, k_h2h = jax.random.split(key, 5)

    x_t = jax.random.normal(k_x, (batch, input_size), jnp.float32)
    h_prev = jax.random.normal(k_h, (batch, hidden_size), jnp.float32)
    c_prev = jax.random.normal(k_c, (batch, hidden_size // 4), jnp.float32)

    wx, bx = _init_linear(k_x2h, hidden_size, input_size)    # x2h
    wh, bh = _init_linear(k_h2h, hidden_size, hidden_size)   # h2h

    # One-time parameter fusion (hoisted out of the per-step path).
    w_fused, b_fused = fuse_lstm_cell_params(wx, bx, wh, bh)

    h_t, c_t = lstm_cell_forward(x_t, (h_prev, c_prev), w_fused, b_fused)
    jax.block_until_ready((h_t, c_t))

    h_ref, c_ref = _reference(x_t, h_prev, c_prev, wx, bx, wh, bh)
    assert h_t.shape == (batch, hidden_size // 4)
    assert c_t.shape == (batch, hidden_size // 4)
    assert jnp.allclose(h_t, h_ref, atol=1e-5, rtol=1e-5)
    assert jnp.allclose(c_t, c_ref, atol=1e-5, rtol=1e-5)

    # Also exercise the ht_1=None default path (zero initial state).
    h0, c0 = lstm_cell_forward(x_t, None, w_fused, b_fused)
    jax.block_until_ready((h0, c0))
    h0_ref, c0_ref = _reference(x_t, jnp.zeros_like(h_prev),
                                jnp.zeros_like(c_prev), wx, bx, wh, bh)
    assert jnp.allclose(h0, h0_ref, atol=1e-5, rtol=1e-5)
    assert jnp.allclose(c0, c0_ref, atol=1e-5, rtol=1e-5)

    print("KERNEL_OK")
</pallas_src>

<mosaic_0001>
module attributes {stable_mosaic.version = 11 : i64} {
  func.func @lstm_cell_kernel(%arg0: i32, %arg1: memref<8x192xf32, #tpu.memory_space<vmem>>, %arg2: memref<8x32xf32, #tpu.memory_space<vmem>>, %arg3: memref<192x128xf32, #tpu.memory_space<vmem>>, %arg4: memref<1x128xf32, #tpu.memory_space<vmem>>, %arg5: memref<8x32xf32, #tpu.memory_space<vmem>>, %arg6: memref<8x32xf32, #tpu.memory_space<vmem>>) attributes {dimension_semantics = [#tpu.dimension_semantics<parallel>], iteration_bounds = array<i64: 1>, scalar_prefetch = 0 : i64, scratch_operands = 0 : i64, tpu.core_type = #tpu.core_type<tc>, window_params = [{transform_indices = @transform_0, window_bounds = array<i64: 8, 192>}, {transform_indices = @transform_1, window_bounds = array<i64: 8, 32>}, {pipeline_mode = #tpu.pipeline_mode<synchronous>, transform_indices = @transform_2, window_bounds = array<i64: 192, 128>}, {pipeline_mode = #tpu.pipeline_mode<synchronous>, transform_indices = @transform_3, window_bounds = array<i64: 1, 128>}, {transform_indices = @transform_4, window_bounds = array<i64: 8, 32>}, {transform_indices = @transform_5, window_bounds = array<i64: 8, 32>}]} {
    %c0 = arith.constant 0 : index
    %c0_0 = arith.constant 0 : index
    %0 = vector.load %arg1[%c0, %c0_0] : memref<8x192xf32, #tpu.memory_space<vmem>>, vector<8x192xf32>
    %c0_1 = arith.constant 0 : index
    %c0_2 = arith.constant 0 : index
    %1 = vector.load %arg3[%c0_1, %c0_2] : memref<192x128xf32, #tpu.memory_space<vmem>>, vector<192x128xf32>
    %cst = arith.constant dense<0.000000e+00> : vector<8x128xf32>
    %2 = tpu.matmul %0, %1, %cst {dimension_numbers = #tpu.dot_dimension_numbers<[1], [0], [0], [1], [0, 0, 1, 1], [], []>} : vector<8x192xf32>, vector<192x128xf32>, vector<8x128xf32> -> vector<8x128xf32>
    %c0_3 = arith.constant 0 : index
    %c0_4 = arith.constant 0 : index
    %3 = vector.load %arg4[%c0_3, %c0_4] : memref<1x128xf32, #tpu.memory_space<vmem>>, vector<1x128xf32>
    %4 = vector.broadcast %3 : vector<1x128xf32> to vector<8x128xf32>
    %5 = arith.addf %2, %4 : vector<8x128xf32>
    %6 = vector.extract_strided_slice %5 {offsets = [0, 0], sizes = [8, 32], strides = [1, 1]} : vector<8x128xf32> to vector<8x32xf32>
    %7 = vector.extract_strided_slice %5 {offsets = [0, 32], sizes = [8, 32], strides = [1, 1]} : vector<8x128xf32> to vector<8x32xf32>
    %8 = vector.extract_strided_slice %5 {offsets = [0, 64], sizes = [8, 32], strides = [1, 1]} : vector<8x128xf32> to vector<8x32xf32>
    %9 = vector.extract_strided_slice %5 {offsets = [0, 96], sizes = [8, 32], strides = [1, 1]} : vector<8x128xf32> to vector<8x32xf32>
    %10 = arith.negf %7 : vector<8x32xf32>
    %11 = math.exp %10 : vector<8x32xf32>
    %cst_5 = arith.constant 1.000000e+00 : f32
    %12 = vector.broadcast %cst_5 : f32 to vector<8x32xf32>
    %13 = arith.addf %12, %11 : vector<8x32xf32>
    %14 = arith.divf %12, %13 : vector<8x32xf32>
    %15 = arith.negf %6 : vector<8x32xf32>
    %16 = math.exp %15 : vector<8x32xf32>
    %cst_6 = arith.constant 1.000000e+00 : f32
    %17 = vector.broadcast %cst_6 : f32 to vector<8x32xf32>
    %18 = arith.addf %17, %16 : vector<8x32xf32>
    %19 = arith.divf %17, %18 : vector<8x32xf32>
    %20 = math.tanh %8 : vector<8x32xf32>
    %21 = arith.negf %9 : vector<8x32xf32>
    %22 = math.exp %21 : vector<8x32xf32>
    %cst_7 = arith.constant 1.000000e+00 : f32
    %23 = vector.broadcast %cst_7 : f32 to vector<8x32xf32>
    %24 = arith.addf %23, %22 : vector<8x32xf32>
    %25 = arith.divf %23, %24 : vector<8x32xf32>
    %c0_8 = arith.constant 0 : index
    %c0_9 = arith.constant 0 : index
    %26 = vector.load %arg2[%c0_8, %c0_9] : memref<8x32xf32, #tpu.memory_space<vmem>>, vector<8x32xf32>
    %27 = arith.mulf %26, %14 : vector<8x32xf32>
    %28 = arith.mulf %19, %20 : vector<8x32xf32>
    %29 = arith.addf %27, %28 : vector<8x32xf32>
    %30 = math.tanh %29 : vector<8x32xf32>
    %31 = arith.mulf %25, %30 : vector<8x32xf32>
    %c0_10 = arith.constant 0 : index
    %c0_11 = arith.constant 0 : index
    %32 = vector.load %arg5[%c0_10, %c0_11] : memref<8x32xf32, #tpu.memory_space<vmem>>, vector<8x32xf32>
    tpu.vector_store %arg5[%c0_10, %c0_11], %31 {strides = array<i32>} : memref<8x32xf32, #tpu.memory_space<vmem>>, vector<8x32xf32>,
    %c0_12 = arith.constant 0 : index
    %c0_13 = arith.constant 0 : index
    %33 = vector.load %arg6[%c0_12, %c0_13] : memref<8x32xf32, #tpu.memory_space<vmem>>, vector<8x32xf32>
    tpu.vector_store %arg6[%c0_12, %c0_13], %29 {strides = array<i32>} : memref<8x32xf32, #tpu.memory_space<vmem>>, vector<8x32xf32>,
    return
  }
  func.func @transform_0(%arg0: i32) -> (i32, i32) {
    %c0_i32 = arith.constant 0 : i32
    %c0_i32_0 = arith.constant 0 : i32
    return %arg0, %c0_i32 : i32, i32
  }
  func.func @transform_1(%arg0: i32) -> (i32, i32) {
    %c0_i32 = arith.constant 0 : i32
    %c0_i32_0 = arith.constant 0 : i32
    return %arg0, %c0_i32 : i32, i32
  }
  func.func @transform_2(%arg0: i32) -> (i32, i32) {
    %c0_i32 = arith.constant 0 : i32
    %c0_i32_0 = arith.constant 0 : i32
    %c0_i32_1 = arith.constant 0 : i32
    return %c0_i32, %c0_i32_0 : i32, i32
  }
  func.func @transform_3(%arg0: i32) -> (i32, i32) {
    %c0_i32 = arith.constant 0 : i32
    %c0_i32_0 = arith.constant 0 : i32
    %c0_i32_1 = arith.constant 0 : i32
    return %c0_i32, %c0_i32_0 : i32, i32
  }
  func.func @transform_4(%arg0: i32) -> (i32, i32) {
    %c0_i32 = arith.constant 0 : i32
    %c0_i32_0 = arith.constant 0 : i32
    return %arg0, %c0_i32 : i32, i32
  }
  func.func @transform_5(%arg0: i32) -> (i32, i32) {
    %c0_i32 = arith.constant 0 : i32
    %c0_i32_0 = arith.constant 0 : i32
    return %arg0, %c0_i32 : i32, i32
  }
}

</mosaic_0001>

<bundles_post_ra>
// kernel: tpu_custom_call.1
= control target key start
LH: loop header
LB: loop body
LE: loop exit
PB: predicated region body
PF: predicated region fallthrough
CT: control target
= control target key end

     0   :  { %11 = vsyncpa [#allocation3], 0  ;;  %s509_s0 = inlined_call_operand.hbm [shape: f32[8,192], index: 0, kind: input, shape index: {}]   ;;  %s510_s1 = inlined_call_operand.hbm [shape: f32[8,32], index: 1, kind: input, shape index: {}]   ;;  %s511_s2 = inlined_call_operand.hbm [shape: f32[192,128], index: 2, kind: input, shape index: {}]   ;;  %s512_s3 = inlined_call_operand.vmem [shape: f32[1,128], index: 3, kind: input, shape index: {}]   ;;  %s513_s4 = inlined_call_operand.hbm [shape: f32[8,32], index: 4, kind: output, shape index: {0}]   ;;  %s514_s5 = inlined_call_operand.hbm [shape: f32[8,32], index: 5, kind: output, shape index: {1}]  }
   0x1   :  { %12 = vsyncpa [#allocation6], 0 }
   0x2   :  { %13 = vsyncpa [#allocation4], 0 }
   0x3   :  { %14 = vsyncpa [#allocation10], 0  ;;  %s403_s18 = smov [#allocation5]   ;;  %s404_s20 = smov [#allocation2]  }
   0x4   :  { %s31_s19 = sshll.u32 %s403_s18, 4  ;;  %s21_s21 = sshll.u32 %s404_s20, 4  ;;  %s32_s19 = int_to_ptr.vmem [resolvable:$true] %s31_s19  ;;  %s22_s21 = int_to_ptr.vmem [resolvable:$true] %s21_s21 }
   0x5   :  { %s285_s24 = scalar_lea.hbm %s510_s1, 128 }
   0x6   :  { %p286_p0 = scmp.ne.s32.totalorder %s510_s1, %s285_s24  ;;  %p289_p1 = scmp.lt.u32.totalorder %s285_s24, %s510_s1 }
   0x8   :  { %p291_p2 = pnand %p289_p1, %p286_p0 }
   0xa   :  { %294 = shalt.err (!%p291_p2)
}
   0xb   :  { %s295_s29 = scalar_lea.vmem %s32_s19, 128  ;;  %p300_p4 = scmp.lt.s32.totalorder %s32_s19, %s32_s19 }
   0xc   :  { %p296_p3 = scmp.ne.s32.totalorder %s32_s19, %s295_s29  ;;  %p301_p5 = scmp.lt.s32.totalorder %s295_s29, %s295_s29 }
   0xe   :  { %p302_p6 = por %p301_p5, %p300_p4 }
  0x10   :  { %p303_p7 = pnand %p302_p6, %p296_p3 }
  0x12   :  { %306 = shalt.err (!%p303_p7)
}
  0x13   :  { %34 = dma.hbm_to_vmem [thread:$0]  %s510_s1, 128, %s32_s19, [#allocation6]  }
  0x14   :  { %s307_s9 = scalar_lea.hbm %s509_s0, 256 }
  0x15   :  { %p308_p8 = scmp.ne.s32.totalorder %s509_s0, %s307_s9  ;;  %p311_p9 = scmp.lt.u32.totalorder %s307_s9, %s509_s0 }
  0x17   :  { %p313_p10 = pnand %p311_p9, %p308_p8 }
  0x19   :  { %316 = shalt.err (!%p313_p10)
}
  0x1a   :  { %s317_s14 = scalar_lea.vmem %s22_s21, 256  ;;  %p322_p12 = scmp.lt.s32.totalorder %s22_s21, %s22_s21 }
  0x1b   :  { %p318_p11 = scmp.ne.s32.totalorder %s22_s21, %s317_s14  ;;  %p323_p13 = scmp.lt.s32.totalorder %s317_s14, %s317_s14 }
  0x1d   :  { %p324_p0 = por %p323_p13, %p322_p12 }
  0x1f   :  { %p325_p1 = pnand %p324_p0, %p318_p11 }
  0x21   :  { %328 = shalt.err (!%p325_p1)
}
  0x22   :  { %24 = dma.hbm_to_vmem [thread:$0]  %s509_s0, 256, %s22_s21, [#allocation3]  }
  0x23   :  { %s405_s16 = smov [#allocation7]   ;;  %s329_s20 = scalar_lea.hbm %s511_s2, 3072 }
  0x24   :  { %s40_s17 = sshll.u32 %s405_s16, 4  ;;  %p330_p2 = scmp.ne.s32.totalorder %s511_s2, %s329_s20  ;;  %s41_s17 = int_to_ptr.vmem [resolvable:$true] %s40_s17 }
  0x25   :  { %p333_p3 = scmp.lt.u32.totalorder %s329_s20, %s511_s2 }
  0x27   :  { %p335_p4 = pnand %p333_p3, %p330_p2 }
  0x29   :  { %338 = shalt.err (!%p335_p4)
}
  0x2a   :  { %s339_s26 = scalar_lea.vmem %s41_s17, 3072  ;;  %p344_p6 = scmp.lt.s32.totalorder %s41_s17, %s41_s17 }
  0x2b   :  { %p340_p5 = scmp.ne.s32.totalorder %s41_s17, %s339_s26  ;;  %p345_p7 = scmp.lt.s32.totalorder %s339_s26, %s339_s26 }
  0x2d   :  { %p346_p8 = por %p345_p7, %p344_p6 }
  0x2f   :  { %p347_p9 = pnand %p346_p8, %p340_p5 }
  0x31   :  { %350 = shalt.err (!%p347_p9)
}
  0x32   :  { %s406_s0 = smov 128   ;;  %s407_s21 = smov 8  }
  0x33   :  { %46 = dma.hbm_to_vmem [thread:$0]  %s511_s2, 3072, %s41_s17, [#allocation6], %s406_s0, %s406_s0, %s407_s21  }
  0x34   :  { %395 = dma.done.wait [#allocation3], 256  }
  0x35   :  { %396 = vsyncadd [#allocation3], 4294967040 }
  0x36   :  { %397 = dma.done.wait [#allocation6], 3200  }
  0x37   :  { %398 = vsyncadd [#allocation6], 4294964096  ;;  %v408_v0 = vmov 0.0|0.0   ;;  %v60_v1 = vld [vmem:[#allocation7] sm:$0xff]  ;;  %v61_v2 = vld [vmem:[#allocation7 + $0x8] sm:$0xff]  ;;  %vm91_vm0 = vcmask 523264  }
  0x38   :  { %230 = vmatprep.subr.bf16.mxu0 %v408_v0  ;;  %v62_v3 = vld [vmem:[#allocation7 + $0x10] sm:$0xff]  ;;  %v231_v4 = vpack.c.bf16 %v61_v2, %v60_v1  ;;  %v63_v5 = vld [vmem:[#allocation7 + $0x18] sm:$0xff]  ;;  %v64_v7 = vld [vmem:[#allocation7 + $0x20] sm:$0xff]  ;;  %s409_s30 = smov 96   ;;  %s410_s6 = smov 64   ;;  %vm194_vm1 = vcmask 261120  }
  0x39   :  { %v234_v6 = vpack.c.bf16 %v63_v5, %v62_v3  ;;  %v65_v8 = vld [vmem:[#allocation7 + $0x28] sm:$0xff]  ;;  %v66_v10 = vld [vmem:[#allocation7 + $0x30] sm:$0xff]  ;;  %v67_v11 = vld [vmem:[#allocation7 + $0x38] sm:$0xff] }
  0x3a   :  { %232 = vmatpush1.bf16.msra.mxu0 %v231_v4  ;;  %v237_v9 = vpack.c.bf16 %v65_v8, %v64_v7  ;;  %v59_v12 = vld [vmem:[#allocation2 + $0x8] sm:$0xff]  ;;  %v240_v13 = vpack.c.bf16 %v67_v11, %v66_v10  ;;  %v68_v14 = vld [vmem:[#allocation7 + $0x40] sm:$0xff]  ;;  %v69_v15 = vld [vmem:[#allocation7 + $0x48] sm:$0xff] }
  0x3b   :  { %233 = vmatprep.subr.bf16.mxu0 %v408_v0  ;;  %228 = vmatprep.mubr.msk.f32.mxu0 %vm91_vm0, %v59_v12  ;;  %v243_v16 = vpack.c.bf16 %v69_v15, %v68_v14  ;;  %v70_v17 = vld [vmem:[#allocation7 + $0x50] sm:$0xff]  ;;  %v71_v18 = vld [vmem:[#allocation7 + $0x58] sm:$0xff]  ;;  %v72_v20 = vld [vmem:[#allocation7 + $0x60] sm:$0xff] }
  0x3c   :  { %v246_v19 = vpack.c.bf16 %v71_v18, %v70_v17  ;;  %v73_v21 = vld [vmem:[#allocation7 + $0x68] sm:$0xff]  ;;  %v74_v23 = vld [vmem:[#allocation7 + $0x70] sm:$0xff]  ;;  %v75_v24 = vld [vmem:[#allocation7 + $0x78] sm:$0xff] }
  0x3d   :  { %v249_v22 = vpack.c.bf16 %v73_v21, %v72_v20  ;;  %v252_v25 = vpack.c.bf16 %v75_v24, %v74_v23  ;;  %v76_v26 = vld [vmem:[#allocation7 + $0x80] sm:$0xff]  ;;  %v77_v27 = vld [vmem:[#allocation7 + $0x88] sm:$0xff]  ;;  %v78_v29 = vld [vmem:[#allocation7 + $0x90] sm:$0xff] }
  0x3e   :  { %235 = vmatpush1.bf16.msra.mxu0 %v234_v6  ;;  %v255_v28 = vpack.c.bf16 %v77_v27, %v76_v26  ;;  %v79_v30 = vld [vmem:[#allocation7 + $0x98] sm:$0xff]  ;;  %v80_v32 = vld [vmem:[#allocation7 + $0xa0] sm:$0xff]  ;;  %v81_v33 = vld [vmem:[#allocation7 + $0xa8] sm:$0xff] }
  0x3f   :  { %236 = vmatprep.subr.bf16.mxu0 %v408_v0  ;;  %v258_v31 = vpack.c.bf16 %v79_v30, %v78_v29  ;;  %v261_v34 = vpack.c.bf16 %v81_v33, %v80_v32  ;;  %v82_v35 = vld [vmem:[#allocation7 + $0xb0] sm:$0xff]  ;;  %v83_v36 = vld [vmem:[#allocation7 + $0xb8] sm:$0xff]  ;;  %v58_v38 = vld [vmem:[#allocation2] sm:$0xff] }
  0x40   :  { %v264_v37 = vpack.c.bf16 %v83_v36, %v82_v35  ;;  %v227_v39 = vld [vmem:[%s512_s3] ss:$0 sm:$0xff]  ;;  %v172_v49 = vld [vmem:[#allocation5] sm:$0xff]  ;;  %s411_s3 = smov [#allocation9]  }
  0x41   :  { %s213_s7 = sshll.u32 %s411_s3, 4  ;;  %s214_s7 = int_to_ptr.vmem [resolvable:$true] %s213_s7 }
  0x42   :  { %238 = vmatpush1.bf16.msra.mxu0 %v237_v9  ;;  %s351_s8 = scalar_lea.vmem %s214_s7, 128  ;;  %p356_p11 = scmp.lt.s32.totalorder %s214_s7, %s214_s7 }
  0x43   :  { %239 = vmatprep.subr.bf16.mxu0 %v408_v0  ;;  %p352_p10 = scmp.ne.s32.totalorder %s214_s7, %s351_s8  ;;  %p357_p12 = scmp.lt.s32.totalorder %s351_s8, %s351_s8 }
  0x45   :  { %p358_p13 = por %p357_p12, %p356_p11 }
  0x46   :  { %241 = vmatpush1.bf16.msra.mxu0 %v240_v13 }
  0x47   :  { %242 = vmatprep.subr.bf16.mxu0 %v408_v0  ;;  %p359_p0 = pnand %p358_p13, %p352_p10 }
  0x4a   :  { %244 = vmatpush1.bf16.msra.mxu0 %v243_v16 }
  0x4b   :  { %245 = vmatprep.subr.bf16.mxu0 %v408_v0 }
  0x4e   :  { %247 = vmatpush1.bf16.msra.mxu0 %v246_v19 }
  0x4f   :  { %248 = vmatprep.subr.bf16.mxu0 %v408_v0 }
  0x52   :  { %250 = vmatpush1.bf16.msra.mxu0 %v249_v22 }
  0x53   :  { %251 = vmatprep.subr.bf16.mxu0 %v408_v0 }
  0x56   :  { %253 = vmatpush1.bf16.msra.mxu0 %v252_v25 }
  0x57   :  { %254 = vmatprep.subr.bf16.mxu0 %v408_v0 }
  0x5a   :  { %256 = vmatpush1.bf16.msra.mxu0 %v255_v28 }
  0x5b   :  { %257 = vmatprep.subr.bf16.mxu0 %v408_v0 }
  0x5e   :  { %259 = vmatpush1.bf16.msra.mxu0 %v258_v31 }
  0x5f   :  { %260 = vmatprep.subr.bf16.mxu0 %v408_v0 }
  0x62   :  { %262 = vmatpush1.bf16.msra.mxu0 %v261_v34 }
  0x63   :  { %263 = vmatprep.subr.bf16.mxu0 %v408_v0 }
  0x66   :  { %265 = vmatpush1.bf16.msra.mxu0 %v264_v37 }
  0x69   :  { %160 = vmatmul.mubr.f32.vlgmr.msra.gmra.mrb[0].mxu0 %v58_v38 }
 0x13c   :  { %v161_v40 = vpop.f32.mrb[0].mxu0 }
 0x13d   :  { %v162_v41 = vadd.f32 %v227_v39, %v161_v40  ;;  %v163_v42 = vpop.f32.mrb[1].mxu0 }
 0x13f   :  { %v229_v43 = vmul.f32 -1.442695, %v162_v41 }
 0x141   :  { %277 = vpow2.f32 %v229_v43 }
 0x14b   :  { %v278_v44 = vpop.eup %277 }
 0x14c   :  { %v168_v45 = vadd.f32 1.0, %v278_v44 }
 0x14e   :  { %279 = vrcp.f32 %v168_v45 }
 0x14f   :  { %281 = vtanh.f32 %v162_v41 }
 0x158   :  { %v280_v46 = vpop.eup %279 }
 0x159   :  { %174 = vrot.lane.b32.xlu0 %v280_v46, %s409_s30  ;;  %v282_v47 = vpop.eup %281 }
 0x15d   :  { %179 = vrot.lane.b32.xlu0 %v282_v47, %s410_s6 }
 0x1cb   :  { %v175_v48 = vpop.permute.xlu0 %174 }
 0x1cc   :  { %v177_v51 = vmul.f32 %v175_v48, %v172_v49 }
 0x1cf   :  { %v180_v50 = vpop.permute.xlu0 %179 }
 0x1d0   :  { %v182_v52 = vmul.f32 %v280_v46, %v180_v50 }
 0x1d2   :  { %v183_v53 = vadd.f32 %v182_v52, %v177_v51 }
 0x1d4   :  { %283 = vtanh.f32 %v183_v53  ;;  %196 = vst.msk [vmem:[#allocation9] sm:$0xff] %vm194_vm1, %v183_v53 }
 0x1de   :  { %v284_v54 = vpop.eup %283 }
 0x1df   :  { %186 = vrot.lane.b32.xlu1 %v284_v54, %s409_s30 }
 0x1e0   :  { %362 = shalt.err (!%p359_p0)
}
 0x1e1   :  { %s363_s11 = scalar_lea.hbm %s514_s5, 128 }
 0x1e2   :  { %p364_p1 = scmp.ne.s32.totalorder %s514_s5, %s363_s11  ;;  %p367_p2 = scmp.lt.u32.totalorder %s363_s11, %s514_s5 }
 0x1e4   :  { %p369_p3 = pnand %p367_p2, %p364_p1 }
 0x1e6   :  { %372 = shalt.err (!%p369_p3)
}
 0x1e7   :  { %216 = dma.vmem_to_hbm [thread:$0]  %s214_s7, 128, %s514_s5, [#allocation10]  }
 0x1e8   :  { %s412_s17 = smov 32   ;;  %s413_s18 = smov [#allocation8]  }
 0x1e9   :  { %s203_s19 = sshll.u32 %s413_s18, 4  ;;  %s204_s19 = int_to_ptr.vmem [resolvable:$true] %s203_s19 }
 0x1ea   :  { %s373_s20 = scalar_lea.vmem %s204_s19, 128  ;;  %p378_p5 = scmp.lt.s32.totalorder %s204_s19, %s204_s19 }
 0x1eb   :  { %p374_p4 = scmp.ne.s32.totalorder %s204_s19, %s373_s20  ;;  %p379_p6 = scmp.lt.s32.totalorder %s373_s20, %s373_s20 }
 0x1ed   :  { %p380_p7 = por %p379_p6, %p378_p5 }
 0x1ef   :  { %p381_p8 = pnand %p380_p7, %p374_p4 }
 0x251   :  { %v187_v55 = vpop.permute.xlu1 %186 }
 0x252   :  { %v189_v56 = vmul.f32 %v280_v46, %v187_v55 }
 0x254   :  { %191 = vrot.lane.b32.xlu1 %v189_v56, %s412_s17 }
 0x2c6   :  { %v192_v57 = vpop.permute.xlu1 %191 }
 0x2c7   :  { %195 = vst.msk [vmem:[#allocation8] sm:$0xff] %vm194_vm1, %v192_v57 }
 0x2c8   :  { %384 = shalt.err (!%p381_p8)
}
 0x2c9   :  { %s385_s5 = scalar_lea.hbm %s513_s4, 128 }
 0x2ca   :  { %p386_p9 = scmp.ne.s32.totalorder %s513_s4, %s385_s5  ;;  %p389_p10 = scmp.lt.u32.totalorder %s385_s5, %s513_s4 }
 0x2cc   :  { %p391_p11 = pnand %p389_p10, %p386_p9 }
 0x2ce   :  { %394 = shalt.err (!%p391_p11)
}
 0x2cf   :  { %206 = dma.vmem_to_hbm [thread:$0]  %s204_s19, 128, %s513_s4, [#allocation4]  }
 0x2d0   :  { %399 = dma.done.wait [#allocation4], 128  }
 0x2d1   :  { %400 = vsyncadd [#allocation4], 4294967168 }
 0x2d2   :  { %401 = dma.done.wait [#allocation10], 128  }
 0x2d3   :  { %402 = vsyncadd [#allocation10], 4294967168 }
 0x2d4   :  { %223 = vsyncpa [#allocation3], 1 }
 0x2d5   :  { %224 = vsyncpa [#allocation6], 1 }
 0x2d6   :  { %225 = vsyncpa [#allocation4], 1 }
 0x2d7   :  { %226 = vsyncpa [#allocation10], 1 }

</bundles_post_ra>
